<compile_context>
chip_gen: v5e
topology: v5e:2x2
jax: 0.10.0
libtpu: 0.0.40
codegen_flags: <defaults>
</compile_context>

<pallas_src>
import functools

import jax
import jax.numpy as jnp
from jax import lax
from jax.experimental import pallas as pl
from jax.experimental.pallas import tpu as pltpu

_LANE = 128


# ---------------------------------------------------------------------------
# Fused Pallas kernel (one grid step = one (tile_b, input_dim) batch block)
# ---------------------------------------------------------------------------

def _fused_predictor_kernel(x_ref,
                            w1_ref, b1_ref, w2_ref, b2_ref,          # shared residual block
                            w0_ref, c0_ref, wa_ref, ca_ref, wb_ref, cb_ref,  # MLP head
                            o_ref, *, num_layers):
    """num_layers residual FFN blocks (shared weights) + 3-layer MLP head."""
    h = x_ref[...]                          # (tile_b, input_dim) f32, stays in vregs/VMEM

    w1 = w1_ref[...]                        # weights stay resident across grid steps
    b1 = b1_ref[...]
    w2 = w2_ref[...]
    b2 = b2_ref[...]

    def residual_block(_, h):
        a = jnp.dot(h, w1, preferred_element_type=jnp.float32) + b1
        a = jnp.maximum(a, 0.0)
        return h + jnp.dot(a, w2, preferred_element_type=jnp.float32) + b2

    # Full unroll for small num_layers (LLO scheduling); cap for big ones.
    h = lax.fori_loop(0, num_layers, residual_block, h,
                      unroll=True if num_layers <= 8 else 4)

    # last_mlp: Linear -> ReLU -> Linear -> ReLU -> Linear (last layer padded
    # to a lane-dense output width at prepare time).
    h = jnp.maximum(
        jnp.dot(h, w0_ref[...], preferred_element_type=jnp.float32) + c0_ref[...], 0.0)
    h = jnp.maximum(
        jnp.dot(h, wa_ref[...], preferred_element_type=jnp.float32) + ca_ref[...], 0.0)
    o_ref[...] = jnp.dot(h, wb_ref[...], preferred_element_type=jnp.float32) + cb_ref[...]


# ---------------------------------------------------------------------------
# One-time parameter preparation (NOT per call): f32 (in, out) weights,
# (1, N) f32 bias rows, lane-padded final head.
# ---------------------------------------------------------------------------

def prepare_params(params, *, lane=_LANE):
    w1, b1, w2, b2 = params["layer"]
    (w0, c0), (wa, ca), (wb, cb) = params["mlp"]

    # NOTE: if loading a real torch checkpoint, nn.Linear stores (out, in) —
    # transpose weights here.  init_params below already produces (in, out).
    emb = wb.shape[1]
    emb_pad = pl.cdiv(emb, lane) * lane
    if emb_pad != emb:                      # lane-dense output store path
        wb = jnp.pad(wb, ((0, 0), (0, emb_pad - emb)))
        cb = jnp.pad(cb, (0, emb_pad - emb))

    f32 = lambda w: jnp.asarray(w, jnp.float32)
    row = lambda b: jnp.asarray(b, jnp.float32).reshape(1, -1)

    prepared = (f32(w1), row(b1), f32(w2), row(b2),
                f32(w0), row(c0), f32(wa), row(ca), f32(wb), row(cb))
    return tuple(jax.device_put(p) for p in prepared)


# ---------------------------------------------------------------------------
# Forward pass wrapper (single pallas_call over an outer-batch grid)
# ---------------------------------------------------------------------------

@functools.partial(jax.jit, static_argnames=("num_layers", "embedding_size", "tile_b"))
def baseline_hidden_predictor_forward(prepared, x, ptp, latent, *,
                                      num_layers, embedding_size, tile_b=8):
    # ptp and latent are unused by the reference forward pass.
    del ptp, latent
    bs = x.shape[0]
    xf = x.reshape(bs, -1)                          # free metadata reshape
    if xf.dtype != jnp.float32:
        xf = xf.astype(jnp.float32)
    input_dim = xf.shape[1]

    bs_pad = pl.cdiv(bs, tile_b) * tile_b
    if bs_pad != bs:
        xf = jnp.pad(xf, ((0, bs_pad - bs), (0, 0)))
    n_steps = bs_pad // tile_b

    (w1, b1, w2, b2, w0, c0, wa, ca, wb, cb) = prepared
    emb_pad = wb.shape[1]

    def weight_spec(p):                             # constant index_map -> stays resident
        return pl.BlockSpec(p.shape, lambda i: (0,) * p.ndim)

    kernel = functools.partial(_fused_predictor_kernel, num_layers=num_layers)

    # v7x megacore: split grid steps across the two TensorCores.
    param_bytes = sum(int(p.size) * p.dtype.itemsize for p in prepared)
    cp_kwargs = dict(dimension_semantics=("parallel",))
    if param_bytes > (16 << 20):                    # VMEM guard for scaled-up configs
        cp_kwargs["vmem_limit_bytes"] = min(100 << 20, 4 * param_bytes + (8 << 20))
    # TODO(synk): if input_dim / dim_feedforward are ever scaled so the whole
    # weights no longer fit v7x's scoped VMEM, switch w1/w2 to K-tiled blocks
    # with a reduction grid axis + f32 VMEM accumulator.

    out = pl.pallas_call(
        kernel,
        out_shape=jax.ShapeDtypeStruct((bs_pad, emb_pad), jnp.float32),
        grid=(n_steps,),
        in_specs=[pl.BlockSpec((tile_b, input_dim), lambda i: (i, 0))]
                 + [weight_spec(p) for p in prepared],
        out_specs=pl.BlockSpec((tile_b, emb_pad), lambda i: (i, 0)),
        compiler_params=pltpu.CompilerParams(**cp_kwargs),
    )(xf, *prepared)

    return out[:bs, :embedding_size]


# ---------------------------------------------------------------------------
# Parameter construction (mimics torch Linear default init:
# U(-1/sqrt(fan_in), 1/sqrt(fan_in)); stored as (in_features, out_features)).
# ---------------------------------------------------------------------------

def _init_linear(key, fan_in, fan_out):
    kw, kb = jax.random.split(key)
    bound = 1.0 / jnp.sqrt(fan_in)
    w = jax.random.uniform(kw, (fan_in, fan_out), jnp.float32, -bound, bound)
    b = jax.random.uniform(kb, (fan_out,), jnp.float32, -bound, bound)
    return w, b


def init_params(key, embedding_size, num_conditional_frames, dim_feedforward):
    input_dim = num_conditional_frames * embedding_size
    k_layer, k0, k1, k2 = jax.random.split(key, 4)

    # _get_clones deep-copies one initialized BaselineLayer -> shared weights.
    ka, kb = jax.random.split(k_layer)
    w1, b1 = _init_linear(ka, input_dim, dim_feedforward)
    w2, b2 = _init_linear(kb, dim_feedforward, input_dim)

    # last_mlp = MLP(input_dim, embedding_size, embedding_size, 3)
    mlp = [
        _init_linear(k0, input_dim, embedding_size),
        _init_linear(k1, embedding_size, embedding_size),
        _init_linear(k2, embedding_size, embedding_size),
    ]
    return {"layer": (w1, b1, w2, b2), "mlp": mlp}


# ---------------------------------------------------------------------------
# Main
# ---------------------------------------------------------------------------

if __name__ == "__main__":
    batch = 32                              # outer batch, split over grid=(4,)
    embedding_size = 32
    num_conditional_frames = 4              # input_dim = 128
    latent_size = 16
    ptp_size = 8
    transformer_hparams = {"dim_feedforward": 256, "layers": 2}

    key = jax.random.PRNGKey(0)
    k_params, k_x, k_ptp, k_lat = jax.random.split(key, 4)

    params = init_params(k_params, embedding_size, num_conditional_frames,
                         transformer_hparams["dim_feedforward"])
    prepared = prepare_params(params)       # one-time, outside the jitted forward

    x = jax.random.normal(
        k_x, (batch, num_conditional_frames, embedding_size), jnp.float32)
    ptp = jax.random.normal(k_ptp, (batch, ptp_size), jnp.float32)
    latent = jax.random.normal(k_lat, (batch, latent_size), jnp.float32)

    out = baseline_hidden_predictor_forward(
        prepared, x, ptp, latent,
        num_layers=transformer_hparams["layers"],
        embedding_size=embedding_size, tile_b=8)
    out = jax.block_until_ready(out)

    assert out.shape == (batch, embedding_size), out.shape
    assert out.dtype == jnp.float32

    # Pure-JAX f32 reference (HIGHEST matmul precision) — parity check, not a
    # bf16-simulating self-referential check.
    def ref_forward(params, x, num_layers):
        mm = functools.partial(jnp.dot, precision=jax.lax.Precision.HIGHEST)
        bs = x.shape[0]
        h = x.reshape(bs, -1).astype(jnp.float32)
        w1, b1, w2, b2 = params["layer"]
        for _ in range(num_layers):
            h = h + (mm(jnp.maximum(mm(h, w1) + b1, 0.0), w2) + b2)
        (w0, c0), (wa, ca), (wb, cb) = params["mlp"]
        h = jnp.maximum(mm(h, w0) + c0, 0.0)
        h = jnp.maximum(mm(h, wa) + ca, 0.0)
        return mm(h, wb) + cb

    ref = ref_forward(params, x, transformer_hparams["layers"])
    max_err = float(jnp.max(jnp.abs(out - ref)))
    assert jnp.allclose(out, ref, atol=1e-2, rtol=1e-2), max_err

    print("KERNEL_OK")
</pallas_src>

<mosaic_0001>
module attributes {stable_mosaic.version = 11 : i64} {
  func.func @_fused_predictor_kernel(%arg0: i32, %arg1: memref<8x128xf32, #tpu.memory_space<vmem>>, %arg2: memref<128x256xf32, #tpu.memory_space<vmem>>, %arg3: memref<1x256xf32, #tpu.memory_space<vmem>>, %arg4: memref<256x128xf32, #tpu.memory_space<vmem>>, %arg5: memref<1x128xf32, #tpu.memory_space<vmem>>, %arg6: memref<128x32xf32, #tpu.memory_space<vmem>>, %arg7: memref<1x32xf32, #tpu.memory_space<vmem>>, %arg8: memref<32x32xf32, #tpu.memory_space<vmem>>, %arg9: memref<1x32xf32, #tpu.memory_space<vmem>>, %arg10: memref<32x128xf32, #tpu.memory_space<vmem>>, %arg11: memref<1x128xf32, #tpu.memory_space<vmem>>, %arg12: memref<8x128xf32, #tpu.memory_space<vmem>>) attributes {dimension_semantics = [#tpu.dimension_semantics<parallel>], iteration_bounds = array<i64: 4>, scalar_prefetch = 0 : i64, scratch_operands = 0 : i64, tpu.core_type = #tpu.core_type<tc>, window_params = [{transform_indices = @transform_0, window_bounds = array<i64: 8, 128>}, {pipeline_mode = #tpu.pipeline_mode<synchronous>, transform_indices = @transform_1, window_bounds = array<i64: 128, 256>}, {pipeline_mode = #tpu.pipeline_mode<synchronous>, transform_indices = @transform_2, window_bounds = array<i64: 1, 256>}, {pipeline_mode = #tpu.pipeline_mode<synchronous>, transform_indices = @transform_3, window_bounds = array<i64: 256, 128>}, {pipeline_mode = #tpu.pipeline_mode<synchronous>, transform_indices = @transform_4, window_bounds = array<i64: 1, 128>}, {pipeline_mode = #tpu.pipeline_mode<synchronous>, transform_indices = @transform_5, window_bounds = array<i64: 128, 32>}, {pipeline_mode = #tpu.pipeline_mode<synchronous>, transform_indices = @transform_6, window_bounds = array<i64: 1, 32>}, {pipeline_mode = #tpu.pipeline_mode<synchronous>, transform_indices = @transform_7, window_bounds = array<i64: 32, 32>}, {pipeline_mode = #tpu.pipeline_mode<synchronous>, transform_indices = @transform_8, window_bounds = array<i64: 1, 32>}, {pipeline_mode = #tpu.pipeline_mode<synchronous>, transform_indices = @transform_9, window_bounds = array<i64: 32, 128>}, {pipeline_mode = #tpu.pipeline_mode<synchronous>, transform_indices = @transform_10, window_bounds = array<i64: 1, 128>}, {transform_indices = @transform_11, window_bounds = array<i64: 8, 128>}]} {
    %c0 = arith.constant 0 : index
    %c0_0 = arith.constant 0 : index
    %0 = vector.load %arg1[%c0, %c0_0] : memref<8x128xf32, #tpu.memory_space<vmem>>, vector<8x128xf32>
    %c0_1 = arith.constant 0 : index
    %c0_2 = arith.constant 0 : index
    %1 = vector.load %arg2[%c0_1, %c0_2] : memref<128x256xf32, #tpu.memory_space<vmem>>, vector<128x256xf32>
    %c0_3 = arith.constant 0 : index
    %c0_4 = arith.constant 0 : index
    %2 = vector.load %arg3[%c0_3, %c0_4] : memref<1x256xf32, #tpu.memory_space<vmem>>, vector<1x256xf32>
    %c0_5 = arith.constant 0 : index
    %c0_6 = arith.constant 0 : index
    %3 = vector.load %arg4[%c0_5, %c0_6] : memref<256x128xf32, #tpu.memory_space<vmem>>, vector<256x128xf32>
    %c0_7 = arith.constant 0 : index
    %c0_8 = arith.constant 0 : index
    %4 = vector.load %arg5[%c0_7, %c0_8] : memref<1x128xf32, #tpu.memory_space<vmem>>, vector<1x128xf32>
    %c0_i32 = arith.constant 0 : i32
    %cst = arith.constant dense<0.000000e+00> : vector<8x256xf32>
    %5 = tpu.matmul %0, %1, %cst {dimension_numbers = #tpu.dot_dimension_numbers<[1], [0], [0], [1], [0, 0, 1, 1], [], []>} : vector<8x128xf32>, vector<128x256xf32>, vector<8x256xf32> -> vector<8x256xf32>
    %6 = vector.broadcast %2 : vector<1x256xf32> to vector<8x256xf32>
    %7 = arith.addf %5, %6 : vector<8x256xf32>
    %cst_9 = arith.constant 0.000000e+00 : f32
    %8 = vector.broadcast %cst_9 : f32 to vector<8x256xf32>
    %9 = arith.maximumf %7, %8 : vector<8x256xf32>
    %cst_10 = arith.constant dense<0.000000e+00> : vector<8x128xf32>
    %10 = tpu.matmul %9, %3, %cst_10 {dimension_numbers = #tpu.dot_dimension_numbers<[1], [0], [0], [1], [0, 0, 1, 1], [], []>} : vector<8x256xf32>, vector<256x128xf32>, vector<8x128xf32> -> vector<8x128xf32>
    %11 = arith.addf %0, %10 : vector<8x128xf32>
    %12 = vector.broadcast %4 : vector<1x128xf32> to vector<8x128xf32>
    %13 = arith.addf %11, %12 : vector<8x128xf32>
    %c1_i32 = arith.constant 1 : i32
    %cst_11 = arith.constant dense<0.000000e+00> : vector<8x256xf32>
    %14 = tpu.matmul %13, %1, %cst_11 {dimension_numbers = #tpu.dot_dimension_numbers<[1], [0], [0], [1], [0, 0, 1, 1], [], []>} : vector<8x128xf32>, vector<128x256xf32>, vector<8x256xf32> -> vector<8x256xf32>
    %15 = vector.broadcast %2 : vector<1x256xf32> to vector<8x256xf32>
    %16 = arith.addf %14, %15 : vector<8x256xf32>
    %cst_12 = arith.constant 0.000000e+00 : f32
    %17 = vector.broadcast %cst_12 : f32 to vector<8x256xf32>
    %18 = arith.maximumf %16, %17 : vector<8x256xf32>
    %cst_13 = arith.constant dense<0.000000e+00> : vector<8x128xf32>
    %19 = tpu.matmul %18, %3, %cst_13 {dimension_numbers = #tpu.dot_dimension_numbers<[1], [0], [0], [1], [0, 0, 1, 1], [], []>} : vector<8x256xf32>, vector<256x128xf32>, vector<8x128xf32> -> vector<8x128xf32>
    %20 = arith.addf %13, %19 : vector<8x128xf32>
    %21 = vector.broadcast %4 : vector<1x128xf32> to vector<8x128xf32>
    %22 = arith.addf %20, %21 : vector<8x128xf32>
    %c0_14 = arith.constant 0 : index
    %c0_15 = arith.constant 0 : index
    %23 = vector.load %arg6[%c0_14, %c0_15] : memref<128x32xf32, #tpu.memory_space<vmem>>, vector<128x32xf32>
    %cst_16 = arith.constant dense<0.000000e+00> : vector<8x32xf32>
    %24 = tpu.matmul %22, %23, %cst_16 {dimension_numbers = #tpu.dot_dimension_numbers<[1], [0], [0], [1], [0, 0, 1, 1], [], []>} : vector<8x128xf32>, vector<128x32xf32>, vector<8x32xf32> -> vector<8x32xf32>
    %c0_17 = arith.constant 0 : index
    %c0_18 = arith.constant 0 : index
    %25 = vector.load %arg7[%c0_17, %c0_18] : memref<1x32xf32, #tpu.memory_space<vmem>>, vector<1x32xf32>
    %26 = vector.broadcast %25 : vector<1x32xf32> to vector<8x32xf32>
    %27 = arith.addf %24, %26 : vector<8x32xf32>
    %cst_19 = arith.constant 0.000000e+00 : f32
    %28 = vector.broadcast %cst_19 : f32 to vector<8x32xf32>
    %29 = arith.maximumf %27, %28 : vector<8x32xf32>
    %c0_20 = arith.constant 0 : index
    %c0_21 = arith.constant 0 : index
    %30 = vector.load %arg8[%c0_20, %c0_21] : memref<32x32xf32, #tpu.memory_space<vmem>>, vector<32x32xf32>
    %cst_22 = arith.constant dense<0.000000e+00> : vector<8x32xf32>
    %31 = tpu.matmul %29, %30, %cst_22 {dimension_numbers = #tpu.dot_dimension_numbers<[1], [0], [0], [1], [0, 0, 1, 1], [], []>} : vector<8x32xf32>, vector<32x32xf32>, vector<8x32xf32> -> vector<8x32xf32>
    %c0_23 = arith.constant 0 : index
    %c0_24 = arith.constant 0 : index
    %32 = vector.load %arg9[%c0_23, %c0_24] : memref<1x32xf32, #tpu.memory_space<vmem>>, vector<1x32xf32>
    %33 = vector.broadcast %32 : vector<1x32xf32> to vector<8x32xf32>
    %34 = arith.addf %31, %33 : vector<8x32xf32>
    %cst_25 = arith.constant 0.000000e+00 : f32
    %35 = vector.broadcast %cst_25 : f32 to vector<8x32xf32>
    %36 = arith.maximumf %34, %35 : vector<8x32xf32>
    %c0_26 = arith.constant 0 : index
    %c0_27 = arith.constant 0 : index
    %37 = vector.load %arg10[%c0_26, %c0_27] : memref<32x128xf32, #tpu.memory_space<vmem>>, vector<32x128xf32>
    %cst_28 = arith.constant dense<0.000000e+00> : vector<8x128xf32>
    %38 = tpu.matmul %36, %37, %cst_28 {dimension_numbers = #tpu.dot_dimension_numbers<[1], [0], [0], [1], [0, 0, 1, 1], [], []>} : vector<8x32xf32>, vector<32x128xf32>, vector<8x128xf32> -> vector<8x128xf32>
    %c0_29 = arith.constant 0 : index
    %c0_30 = arith.constant 0 : index
    %39 = vector.load %arg11[%c0_29, %c0_30] : memref<1x128xf32, #tpu.memory_space<vmem>>, vector<1x128xf32>
    %40 = vector.broadcast %39 : vector<1x128xf32> to vector<8x128xf32>
    %41 = arith.addf %38, %40 : vector<8x128xf32>
    %c0_31 = arith.constant 0 : index
    %c0_32 = arith.constant 0 : index
    %42 = vector.load %arg12[%c0_31, %c0_32] : memref<8x128xf32, #tpu.memory_space<vmem>>, vector<8x128xf32>
    tpu.vector_store %arg12[%c0_31, %c0_32], %41 {strides = array<i32>} : memref<8x128xf32, #tpu.memory_space<vmem>>, vector<8x128xf32>,
    return
  }
  func.func @transform_0(%arg0: i32) -> (i32, i32) {
    %c0_i32 = arith.constant 0 : i32
    %c0_i32_0 = arith.constant 0 : i32
    return %arg0, %c0_i32 : i32, i32
  }
  func.func @transform_1(%arg0: i32) -> (i32, i32) {
    %c0_i32 = arith.constant 0 : i32
    %c0_i32_0 = arith.constant 0 : i32
    %c0_i32_1 = arith.constant 0 : i32
    return %c0_i32, %c0_i32_0 : i32, i32
  }
  func.func @transform_2(%arg0: i32) -> (i32, i32) {
    %c0_i32 = arith.constant 0 : i32
    %c0_i32_0 = arith.constant 0 : i32
    %c0_i32_1 = arith.constant 0 : i32
    return %c0_i32, %c0_i32_0 : i32, i32
  }
  func.func @transform_3(%arg0: i32) -> (i32, i32) {
    %c0_i32 = arith.constant 0 : i32
    %c0_i32_0 = arith.constant 0 : i32
    %c0_i32_1 = arith.constant 0 : i32
    return %c0_i32, %c0_i32_0 : i32, i32
  }
  func.func @transform_4(%arg0: i32) -> (i32, i32) {
    %c0_i32 = arith.constant 0 : i32
    %c0_i32_0 = arith.constant 0 : i32
    %c0_i32_1 = arith.constant 0 : i32
    return %c0_i32, %c0_i32_0 : i32, i32
  }
  func.func @transform_5(%arg0: i32) -> (i32, i32) {
    %c0_i32 = arith.constant 0 : i32
    %c0_i32_0 = arith.constant 0 : i32
    %c0_i32_1 = arith.constant 0 : i32
    return %c0_i32, %c0_i32_0 : i32, i32
  }
  func.func @transform_6(%arg0: i32) -> (i32, i32) {
    %c0_i32 = arith.constant 0 : i32
    %c0_i32_0 = arith.constant 0 : i32
    %c0_i32_1 = arith.constant 0 : i32
    return %c0_i32, %c0_i32_0 : i32, i32
  }
  func.func @transform_7(%arg0: i32) -> (i32, i32) {
    %c0_i32 = arith.constant 0 : i32
    %c0_i32_0 = arith.constant 0 : i32
    %c0_i32_1 = arith.constant 0 : i32
    return %c0_i32, %c0_i32_0 : i32, i32
  }
  func.func @transform_8(%arg0: i32) -> (i32, i32) {
    %c0_i32 = arith.constant 0 : i32
    %c0_i32_0 = arith.constant 0 : i32
    %c0_i32_1 = arith.constant 0 : i32
    return %c0_i32, %c0_i32_0 : i32, i32
  }
  func.func @transform_9(%arg0: i32) -> (i32, i32) {
    %c0_i32 = arith.constant 0 : i32
    %c0_i32_0 = arith.constant 0 : i32
    %c0_i32_1 = arith.constant 0 : i32
    return %c0_i32, %c0_i32_0 : i32, i32
  }
  func.func @transform_10(%arg0: i32) -> (i32, i32) {
    %c0_i32 = arith.constant 0 : i32
    %c0_i32_0 = arith.constant 0 : i32
    %c0_i32_1 = arith.constant 0 : i32
    return %c0_i32, %c0_i32_0 : i32, i32
  }
  func.func @transform_11(%arg0: i32) -> (i32, i32) {
    %c0_i32 = arith.constant 0 : i32
    %c0_i32_0 = arith.constant 0 : i32
    return %arg0, %c0_i32 : i32, i32
  }
}

</mosaic_0001>

<bundles_post_ra>
// kernel: baseline_hidden_predictor_forward.1
= control target key start
LH: loop header
LB: loop body
LE: loop exit
PB: predicated region body
PF: predicated region fallthrough
CT: control target
= control target key end

     0   :  { %s1801_s0 = inlined_call_operand.vmem [shape: f32[32,128], index: 0, kind: input, shape index: {}]   ;;  %s1802_s1 = inlined_call_operand.vmem [shape: f32[128,256], index: 1, kind: input, shape index: {}]   ;;  %s1803_s2 = inlined_call_operand.hbm [shape: f32[1,256], index: 2, kind: input, shape index: {}]   ;;  %s1804_s3 = inlined_call_operand.hbm [shape: f32[256,128], index: 3, kind: input, shape index: {}]   ;;  %s1805_s4 = inlined_call_operand.hbm [shape: f32[1,128], index: 4, kind: input, shape index: {}]   ;;  %s1806_s5 = inlined_call_operand.vmem [shape: f32[128,32], index: 5, kind: input, shape index: {}]   ;;  %s1807_s6 = inlined_call_operand.vmem [shape: f32[1,32], index: 6, kind: input, shape index: {}]   ;;  %s1808_s7 = inlined_call_operand.vmem [shape: f32[32,32], index: 7, kind: input, shape index: {}]   ;;  %s1809_s8 = inlined_call_operand.vmem [shape: f32[1,32], index: 8, kind: input, shape index: {}]   ;;  %s1810_s9 = inlined_call_operand.hbm [shape: f32[32,128], index: 9, kind: input, shape index: {}]   ;;  %s1811_s10 = inlined_call_operand.vmem [shape: f32[1,128], index: 10, kind: input, shape index: {}]   ;;  %s1812_s11 = inlined_call_operand.hbm [shape: f32[32,128], index: 11, kind: output, shape index: {}]  }
   0x1   :  { %1818 = sst [smem:[#allocation20_spill]] %s1803_s2 }
   0x2   :  { %1819 = sst [smem:[#allocation21_spill]] %s1804_s3 }
   0x3   :  { %16 = vsyncpa [#allocation3], 0 }
   0x4   :  { %17 = vsyncpa [#allocation6], 0 }
   0x5   :  { %18 = vsyncpa [#allocation9], 0 }
   0x6   :  { %19 = vsyncpa [#allocation4], 0 }
   0x7   :  { %21 = vsyncpa [#allocation4 + $0x1], 0  ;;  %s1278_s17 = smov 0   ;;  %s1280_s18 = smov 0  }
   0x8   :  { %s1282_s19 = smov 0   ;;  %s1284_s20 = smov 0  }
   0x9 LB: > { %1820 = sst [smem:[#allocation15_spill]] %s1198_s17  ;;  %s1299_s21 = sadd.s32 4294967295, %s1210_s20   ;;  %s1210_s20 = sphi %s1284_s20, %s1833_s20   ;;  %s1206_s19 = sphi %s1282_s19, %s1835_s19   ;;  %s1202_s18 = sphi %s1280_s18, %s1837_s18   ;;  %s1198_s17 = sphi %s1278_s17, %s1836_s17  }
   0xa   : > { %1821 = sst [smem:[#allocation16_spill]] %s1206_s19  ;;  %s910_s22 = sadd.s32 4294967294, %s1210_s20  }
   0xb   : > { %s1303_s23 = sadd.s32 1, %s1210_s20   ;;  %s270_s24 = sadd.s32 1, %s1206_s19 }
   0xc   : > { %1822 = sst [smem:[#allocation17_spill]] %s1303_s23  ;;  %s267_s25 = ssub.s32 %s1210_s20, %s1303_s23 }
   0xd   : > { %p280_p0 = scmp.ne.s32.totalorder %s1206_s19, %s1202_s18  ;;  %p268_p1 = scmp.eq.s32.totalorder %s267_s25, 0 }
   0xe   : > { %p281_p2 = scmp.eq.s32.totalorder %s1299_s21, 3  ;;  %p286_p3 = scmp.ne.s32.totalorder %s1202_s18, %s1198_s17 }
   0xf   : > { %p287_p4 = scmp.eq.s32.totalorder %s910_s22, 3  ;;  %p911_p7 = scmp.ge.s32.totalorder %s1210_s20, 1 }
  0x10   : > { %s1314_s26 = scalar_select %p268_p1, %s1206_s19, %s270_s24  }
  0x11   : > { %p1316_p5 = por %p281_p2, %p280_p0  ;;  %p1320_p6 = por %p287_p4, %p286_p3 }
  0x12   : > { %1823 = sst [smem:[#allocation18_spill]] %s1314_s26  ;;  %p294_p8 = scmp.lt.s32.totalorder %s1210_s20, 5 }
  0x13   : > { %s1825_s28 = scalar_select %p1320_p6, 1, 0 }
  0x14   : > { %p965_p9 = scmp.eq.s32.totalorder %s1299_s21, 0  ;;  %p1327_p10 = pnand %p911_p7, %p294_p8 }
  0x15   : > { %1826 = sst [smem:[#allocation19_spill]] %s1825_s28  ;;  %s1212_s14 = smov [#allocation5]  }
  0x16   : > { %s1828_s3 = sld [smem:[#allocation21_spill]]  ;;  %p948_p11 = pneg %p1327_p10 }
  0x17   : > { %s322_s15 = sshll.u32 %s1212_s14, 4  ;;  %s1830_s2 = sld [smem:[#allocation20_spill]]  ;;  %s323_s15 = int_to_ptr.vmem [resolvable:$true] %s322_s15 }
  0x18   : > { %p1338_p12 = pnand %p965_p9, %p948_p11  ;;  %s1213_s30 = smov 128  }
  0x19   : > { %s1214_s12 = smov 8   ;;  %s1215_s14 = smov [#allocation2]  }
  0x1a   : > { %s335_s23 = sshll.u32 %s1805_s4, 4  ;;  %s1216_s28 = smov [#allocation7]   ;;  %s336_s23 = int_to_ptr.hbm [resolvable:$true] %s335_s23 }
  0x1b   : > { %s337_s17 = sshll.u32 %s1216_s28, 4  ;;  %s338_s17 = int_to_ptr.vmem [resolvable:$true] %s337_s17 }
  0x1c   : > { %s320_s13 = sshll.u32 %s1828_s3, 4  ;;  %s311_s3 = sshll.u32 %s1215_s14, 4  ;;  %s321_s13 = int_to_ptr.hbm [resolvable:$true] %s320_s13  ;;  %s312_s3 = int_to_ptr.vmem [resolvable:$true] %s311_s3 }
  0x1d   : > { %s309_s25 = sshll.u32 %s1830_s2, 4  ;;  %s358_s2 = sshll.u32 %s1810_s9, 4  ;;  %s310_s25 = int_to_ptr.hbm [resolvable:$true] %s309_s25  ;;  %s359_s2 = int_to_ptr.hbm [resolvable:$true] %s358_s2 }
  0x1e   : > { %954 = dma.hbm_to_vmem [thread:$0]  (!%p1338_p12), %s321_s13, 4096, %s323_s15, [#allocation6], %s1213_s30, %s1213_s30, %s1214_s12  }
  0x1f   : > { %951 = dma.hbm_to_vmem [thread:$0]  (!%p1338_p12), %s310_s25, 32, %s312_s3, [#allocation3]  }
  0x20   : > { %957 = dma.hbm_to_vmem [thread:$0]  (!%p1338_p12), %s336_s23, 16, %s338_s17, [#allocation6]  }
  0x21   : > { %s1217_s13 = smov [#allocation8]   ;;  %386 = sbr.rel (%p1327_p10) target bundleno = 1008 (0x3f0), region = 64 }
  0x22   : > { %s360_s15 = sshll.u32 %s1217_s13, 4  ;;  %s361_s15 = int_to_ptr.vmem [resolvable:$true] %s360_s15 }
  0x23   : > { %960 = dma.hbm_to_vmem [thread:$0]  (!%p1338_p12), %s359_s2, 512, %s361_s15, [#allocation9], %s1213_s30, %s1213_s30, %s1214_s12  }
  0x26   : > { %1181 = dma.done.wait (%p965_p9), [#allocation3], 32  }
  0x27   : > { %1183 = vsyncadd (%p965_p9), [#allocation3], 4294967264 }
  0x28   : > { %1185 = dma.done.wait (%p965_p9), [#allocation6], 4112  }
  0x29   : > { %1187 = vsyncadd (%p965_p9), [#allocation6], 4294963184 }
  0x2a   : > { %1189 = dma.done.wait (%p965_p9), [#allocation9], 512  }
  0x2b   : > { %1191 = vsyncadd (%p965_p9), [#allocation9], 4294966784  ;;  %v1376_v0 = vld [vmem:[%s1802_s1 + $0xf0] sm:$0xff]  ;;  %v1381_v1 = vld [vmem:[%s1802_s1 + $0xf8] sm:$0xff]  ;;  %p441_p13 = scmp.lt.s32.totalorder %s1299_s21, 3  ;;  %vm737_vm0 = vcmask 261120  }
  0x2c   : > { %v1386_v2 = vld [vmem:[%s1802_s1 + $0xe0] sm:$0xff]  ;;  %517 = vmatpush.msra.mxu0 %v1376_v0  ;;  %537 = vmatpush.msra.mxu1 %v1381_v1  ;;  %v1393_v3 = vld [vmem:[%s1802_s1 + $0xe8] sm:$0xff]  ;;  %v1398_v4 = vld [vmem:[%s1802_s1 + $0xd0] sm:$0xff]  ;;  %s438_s12 = sand.u32 1, %s1202_s18   ;;  %s1156_s25 = scalar_lea.hbm %s1812_s11, 32 }
  0x2d   : > { %v1403_v5 = vld [vmem:[%s1802_s1 + $0xd8] sm:$0xff]  ;;  %v1410_v6 = vld [vmem:[%s1802_s1 + $0xc0] sm:$0xff]  ;;  %v1415_v7 = vld [vmem:[%s1802_s1 + $0xc8] sm:$0xff]  ;;  %s1545_s24 = scalar_select %p441_p13, %s1299_s21, 3 }
  0x2e   : > { %518 = vmatpush.msra.mxu0 %v1386_v2  ;;  %538 = vmatpush.msra.mxu1 %v1393_v3  ;;  %v1422_v8 = vld [vmem:[%s1802_s1 + $0xb0] sm:$0xff]  ;;  %v1427_v9 = vld [vmem:[%s1802_s1 + $0xb8] sm:$0xff]  ;;  %v1434_v10 = vld [vmem:[%s1802_s1 + $0xa0] sm:$0xff]  ;;  %s922_s14 = sshll.u32 %s438_s12, 3  ;;  %s795_s26 = scalar_lea.sflag [#allocation4], %s438_s12 }
  0x2f   : > { %v1439_v11 = vld [vmem:[%s1802_s1 + $0xa8] sm:$0xff]  ;;  %v1446_v12 = vld [vmem:[%s1802_s1 + $0x90] sm:$0xff]  ;;  %v1451_v13 = vld [vmem:[%s1802_s1 + $0x98] sm:$0xff]  ;;  %s923_s17 = sshll.u32 %s1545_s24, 3 }
  0x30   : > { %519 = vmatpush.msra.mxu0 %v1398_v4  ;;  %539 = vmatpush.msra.mxu1 %v1403_v5  ;;  %v1455_v14 = vld [vmem:[#allocation5 + $0x78] sm:$0xff]  ;;  %v1459_v16 = vld [vmem:[#allocation5 + $0x70] sm:$0xff]  ;;  %v1469_v18 = vld [vmem:[%s1802_s1 + $0x88] sm:$0xff]  ;;  %s444_s22 = scalar_lea.vmem %s1801_s0, %s923_s17  ;;  %s440_s17 = scalar_lea.vmem [#allocation10], %s922_s14 }
  0x31   : > { %v1457_v15 = vld [vmem:[#allocation5 + $0xf8] sm:$0xff]  ;;  %559 = vmatpush.msra.mxu2 %v1455_v14  ;;  %v1473_v19 = vld [vmem:[#allocation5 + $0xf0] sm:$0xff]  ;;  %v1477_v20 = vld [vmem:[#allocation5 + $0x68] sm:$0xff]  ;;  %s807_s19 = sshll.u32 %s440_s17, 4  ;;  %s808_s19 = int_to_ptr.vmem [resolvable:$true] %s807_s19 }
  0x32   : > { %520 = vmatpush.msra.mxu0 %v1410_v6  ;;  %540 = vmatpush.msra.mxu1 %v1415_v7  ;;  %v1464_v17 = vld [vmem:[%s1802_s1 + $0x80] sm:$0xff]  ;;  %v1479_v21 = vld [vmem:[#allocation5 + $0xe8] sm:$0xff]  ;;  %v1489_v23 = vld [vmem:[%s1802_s1 + $0x78] sm:$0xff] }
  0x33   : > { %579 = vmatpush.msra.mxu3 %v1457_v15  ;;  %v1484_v22 = vld [vmem:[%s1802_s1 + $0x70] sm:$0xff]  ;;  %560 = vmatpush.msra.mxu2 %v1459_v16  ;;  %v1496_v24 = vld [vmem:[#allocation5 + $0x60] sm:$0xff]  ;;  %v1514_v28 = vld [vmem:[#allocation5 + $0x58] sm:$0xff] }
  0x34   : > { %521 = vmatpush.msra.mxu0 %v1422_v8  ;;  %541 = vmatpush.msra.mxu1 %v1427_v9  ;;  %v1498_v25 = vld [vmem:[#allocation5 + $0xe0] sm:$0xff]  ;;  %v1516_v29 = vld [vmem:[#allocation5 + $0xd8] sm:$0xff]  ;;  %v1521_v30 = vld [vmem:[%s1802_s1 + $0x50] sm:$0xff] }
  0x35   : > { %580 = vmatpush.msra.mxu3 %v1473_v19  ;;  %v1503_v26 = vld [vmem:[%s1802_s1 + $0x60] sm:$0xff]  ;;  %v1508_v27 = vld [vmem:[%s1802_s1 + $0x68] sm:$0xff]  ;;  %561 = vmatpush.msra.mxu2 %v1477_v20  ;;  %v1526_v31 = vld [vmem:[%s1802_s1 + $0x58] sm:$0xff] }
  0x36   : > { %522 = vmatpush.msra.mxu0 %v1434_v10  ;;  %542 = vmatpush.msra.mxu1 %v1439_v11  ;;  %v1531_v32 = vld [vmem:[%s1802_s1 + $0x40] sm:$0xff]  ;;  %v1540_v33 = vld [vmem:[%s1802_s1 + $0x48] sm:$0xff]  ;;  %v1547_v34 = vld [vmem:[#allocation5 + $0x50] sm:$0xff] }
  0x37   : > { %581 = vmatpush.msra.mxu3 %v1479_v21  ;;  %562 = vmatpush.msra.mxu2 %v1496_v24  ;;  %v1549_v35 = vld [vmem:[#allocation5 + $0xd0] sm:$0xff]  ;;  %v1553_v36 = vld [vmem:[#allocation5 + $0x48] sm:$0xff]  ;;  %v1574_v40 = vld [vmem:[#allocation5 + $0x40] sm:$0xff] }
  0x38   : > { %523 = vmatpush.msra.mxu0 %v1446_v12  ;;  %543 = vmatpush.msra.mxu1 %v1451_v13  ;;  %v1557_v37 = vld [vmem:[#allocation5 + $0xc8] sm:$0xff]  ;;  %v1567_v39 = vld [vmem:[%s1802_s1 + $0x38] sm:$0xff]  ;;  %v1576_v41 = vld [vmem:[#allocation5 + $0xc0] sm:$0xff] }
  0x39   : > { %582 = vmatpush.msra.mxu3 %v1498_v25  ;;  %563 = vmatpush.msra.mxu2 %v1514_v28  ;;  %v1562_v38 = vld [vmem:[%s1802_s1 + $0x30] sm:$0xff]  ;;  %v1581_v42 = vld [vmem:[%s1802_s1 + $0x20] sm:$0xff]  ;;  %v1586_v43 = vld [vmem:[%s1802_s1 + $0x28] sm:$0xff] }
  0x3a   : > { %524 = vmatpush.msra.mxu0 %v1464_v17  ;;  %544 = vmatpush.msra.mxu1 %v1469_v18  ;;  %v1592_v44 = vld [vmem:[#allocation5 + $0x38] sm:$0xff]  ;;  %v448_v46 = vld [vmem:[%s1802_s1 + $0x10] sm:$0xff]  ;;  %v447_v51 = vld [vmem:[%s1802_s1 + $0x8] sm:$0xff] }
  0x3b   : > { %583 = vmatpush.msra.mxu3 %v1516_v29  ;;  %564 = vmatpush.msra.mxu2 %v1547_v34  ;;  %v1594_v45 = vld [vmem:[#allocation5 + $0xb8] sm:$0xff]  ;;  %v1609_v48 = vld [vmem:[#allocation5 + $0x30] sm:$0xff]  ;;  %v1625_v53 = vld [vmem:[#allocation5 + $0x28] sm:$0xff] }
  0x3c   : > { %525 = vmatpush.msra.mxu0 %v1484_v22  ;;  %545 = vmatpush.msra.mxu1 %v1489_v23  ;;  %v449_v47 = vld [vmem:[%s1802_s1 + $0x18] sm:$0xff]  ;;  %v446_v50 = vld [vmem:[%s1802_s1] sm:$0xff]  ;;  %v1627_v54 = vld [vmem:[#allocation5 + $0xa8] sm:$0xff] }
  0x3d   : > { %584 = vmatpush.msra.mxu3 %v1549_v35  ;;  %565 = vmatpush.msra.mxu2 %v1553_v36  ;;  %v1611_v49 = vld [vmem:[#allocation5 + $0xb0] sm:$0xff]  ;;  %v1621_v52 = vld [vmem:[%s444_s22] sm:$0xff]  ;;  %v480_v61 = vld [vmem:[#allocation5 + $0x8] sm:$0xff]  ;;  %s927_s22 = sshll.u32 %s1299_s21, 3 }
  0x3e   : > { %526 = vmatpush.msra.mxu0 %v1503_v26  ;;  %546 = vmatpush.msra.mxu1 %v1508_v27  ;;  %v1631_v55 = vld [vmem:[#allocation5 + $0x20] sm:$0xff]  ;;  %v1637_v57 = vld [vmem:[#allocation5 + $0x18] sm:$0xff]  ;;  %v481_v59 = vld [vmem:[#allocation5 + $0x10] sm:$0xff]  ;;  %s805_s15 = scalar_lea.hbm %s1812_s11, %s927_s22 }
  0x3f   : > { %585 = vmatpush.msra.mxu3 %v1557_v37  ;;  %566 = vmatpush.msra.mxu2 %v1574_v40  ;;  %v1633_v56 = vld [vmem:[#allocation5 + $0xa0] sm:$0xff]  ;;  %v1639_v58 = vld [vmem:[#allocation5 + $0x98] sm:$0xff]  ;;  %v497_v60 = vld [vmem:[#allocation5 + $0x90] sm:$0xff]  ;;  %s809_s23 = sshll.u32 %s805_s15, 4  ;;  %s810_s23 = int_to_ptr.hbm [resolvable:$true] %s809_s23 }
  0x40   : > { %527 = vmatpush.msra.mxu0 %v1521_v30  ;;  %547 = vmatpush.msra.mxu1 %v1526_v31  ;;  %v496_v62 = vld [vmem:[#allocation5 + $0x88] sm:$0xff]  ;;  %v479_v63 = vld [vmem:[#allocation5] sm:$0xff]  ;;  %s1150_s28 = sshra.s32 %s810_s23, 4  ;;  %s1151_s28 = int_to_ptr.hbm [resolvable:$true] %s1150_s28 }
  0x41   : > { %586 = vmatpush.msra.mxu3 %v1576_v41  ;;  %567 = vmatpush.msra.mxu2 %v1592_v44  ;;  %s1152_s21 = scalar_lea.hbm %s1151_s28, 8  ;;  %p1157_p3 = scmp.lt.s32.totalorder %s1151_s28, %s1812_s11 }
  0x42   : > { %528 = vmatpush.msra.mxu0 %v1531_v32  ;;  %548 = vmatpush.msra.mxu1 %v1540_v33  ;;  %p1153_p0 = scmp.ne.s32.totalorder %s1151_s28, %s1152_s21  ;;  %p1158_p4 = scmp.lt.s32.totalorder %s1156_s25, %s1152_s21 }
  0x43   : > { %587 = vmatpush.msra.mxu3 %v1594_v45  ;;  %568 = vmatpush.msra.mxu2 %v1609_v48 }
  0x44   : > { %529 = vmatpush.msra.mxu0 %v1562_v38  ;;  %549 = vmatpush.msra.mxu1 %v1567_v39  ;;  %p1154_p1 = pnand %p1153_p0, %p1316_p5  ;;  %p1159_p7 = por %p1158_p4, %p1157_p3 }
  0x45   : > { %588 = vmatpush.msra.mxu3 %v1611_v49  ;;  %569 = vmatpush.msra.mxu2 %v1625_v53 }
  0x46   : > { %530 = vmatpush.msra.mxu0 %v1581_v42  ;;  %550 = vmatpush.msra.mxu1 %v1586_v43  ;;  %p1155_p2 = pneg %p1154_p1 }
  0x47   : > { %589 = vmatpush.msra.mxu3 %v1627_v54  ;;  %570 = vmatpush.msra.mxu2 %v1631_v55 }
  0x48   : > { %531 = vmatpush.msra.mxu0 %v448_v46  ;;  %551 = vmatpush.msra.mxu1 %v449_v47  ;;  %p1160_p8 = pnand %p1159_p7, %p1155_p2 }
  0x49   : > { %590 = vmatpush.msra.mxu3 %v1633_v56  ;;  %571 = vmatpush.msra.mxu2 %v1637_v57 }
  0x4a   : > { %532 = vmatpush.msra.mxu0 %v446_v50  ;;  %552 = vmatpush.msra.mxu1 %v447_v51 }
  0x4b   : > { %533 = vmatmul.f32.vlgmr.msra.gmra.mxu0 %v1621_v52  ;;  %553 = vmatmul.f32.vlgmr.msra.gmra.mxu1 %v1621_v52 }
  0x4c   : > { %604 = vmatpush.msrb.mxu0 %v1376_v0  ;;  %624 = vmatpush.msrb.mxu1 %v1381_v1  ;;  %v495_v0 = vld [vmem:[#allocation5 + $0x80] sm:$0xff]  ;;  %v478_v1 = vld [vmem:[#allocation2] sm:$0x3] }
  0x4d   : > { %591 = vmatpush.msra.mxu3 %v1639_v58  ;;  %572 = vmatpush.msra.mxu2 %v481_v59 }
  0x4e   : > { %605 = vmatpush.msrb.mxu0 %v1386_v2  ;;  %625 = vmatpush.msrb.mxu1 %v1393_v3  ;;  %v513_v2 = vperm.slane %v478_v1, 0  ;;  %v514_v3 = vperm.slane %v478_v1, 1 }
  0x4f   : > { %592 = vmatpush.msra.mxu3 %v497_v60  ;;  %573 = vmatpush.msra.mxu2 %v480_v61 }
  0x50   : > { %606 = vmatpush.msrb.mxu0 %v1398_v4  ;;  %626 = vmatpush.msrb.mxu1 %v1403_v5 }
  0x51   : > { %593 = vmatpush.msra.mxu3 %v496_v62  ;;  %574 = vmatpush.msra.mxu2 %v479_v63 }
  0x52   : > { %607 = vmatpush.msrb.mxu0 %v1410_v6  ;;  %627 = vmatpush.msrb.mxu1 %v1415_v7 }
  0x53   : > { %594 = vmatpush.msra.mxu3 %v495_v0  ;;  %646 = vmatpush.msrb.mxu2 %v1455_v14 }
  0x54   : > { %608 = vmatpush.msrb.mxu0 %v1422_v8  ;;  %628 = vmatpush.msrb.mxu1 %v1427_v9 }
  0x55   : > { %666 = vmatpush.msrb.mxu3 %v1457_v15  ;;  %647 = vmatpush.msrb.mxu2 %v1459_v16  ;;  %v703_v16 = vld [vmem:[%s1806_s5 + $0x78] sm:$0xff] }
  0x56   : > { %609 = vmatpush.msrb.mxu0 %v1434_v10  ;;  %629 = vmatpush.msrb.mxu1 %v1439_v11 }
  0x57   : > { %667 = vmatpush.msrb.mxu3 %v1473_v19  ;;  %648 = vmatpush.msrb.mxu2 %v1477_v20  ;;  %v700_v19 = vld [vmem:[%s1806_s5 + $0x60] sm:$0xff]  ;;  %v699_v20 = vld [vmem:[%s1806_s5 + $0x58] sm:$0xff] }
  0x58   : > { %610 = vmatpush.msrb.mxu0 %v1446_v12  ;;  %630 = vmatpush.msrb.mxu1 %v1451_v13  ;;  %v1012_v13 = vld [vmem:[#allocation7] ss:$0 sm:$0xff] }
  0x59   : > { %668 = vmatpush.msrb.mxu3 %v1479_v21  ;;  %649 = vmatpush.msrb.mxu2 %v1496_v24  ;;  %v698_v21 = vld [vmem:[%s1806_s5 + $0x50] sm:$0xff]  ;;  %v695_v24 = vld [vmem:[%s1806_s5 + $0x38] sm:$0xff] }
  0x5a   : > { %611 = vmatpush.msrb.mxu0 %v1464_v17  ;;  %631 = vmatpush.msrb.mxu1 %v1469_v18  ;;  %v702_v17 = vld [vmem:[%s1806_s5 + $0x70] sm:$0xff]  ;;  %v701_v18 = vld [vmem:[%s1806_s5 + $0x68] sm:$0xff] }
  0x5b   : > { %669 = vmatpush.msrb.mxu3 %v1498_v25  ;;  %650 = vmatpush.msrb.mxu2 %v1514_v28  ;;  %v694_v25 = vld [vmem:[%s1806_s5 + $0x30] sm:$0xff] }
  0x5c   : > { %612 = vmatpush.msrb.mxu0 %v1484_v22  ;;  %632 = vmatpush.msrb.mxu1 %v1489_v23  ;;  %v697_v22 = vld [vmem:[%s1806_s5 + $0x48] sm:$0xff]  ;;  %v696_v23 = vld [vmem:[%s1806_s5 + $0x40] sm:$0xff] }
  0x5d   : > { %670 = vmatpush.msrb.mxu3 %v1516_v29  ;;  %651 = vmatpush.msrb.mxu2 %v1547_v34  ;;  %v691_v34 = vld [vmem:[%s1806_s5 + $0x18] sm:$0xff] }
  0x5e   : > { %613 = vmatpush.msrb.mxu0 %v1503_v26  ;;  %633 = vmatpush.msrb.mxu1 %v1508_v27  ;;  %v693_v26 = vld [vmem:[%s1806_s5 + $0x28] sm:$0xff]  ;;  %v692_v27 = vld [vmem:[%s1806_s5 + $0x20] sm:$0xff] }
  0x5f   : > { %671 = vmatpush.msrb.mxu3 %v1549_v35  ;;  %652 = vmatpush.msrb.mxu2 %v1553_v36  ;;  %v690_v35 = vld [vmem:[%s1806_s5 + $0x10] sm:$0xff]  ;;  %v689_v36 = vld [vmem:[%s1806_s5 + $0x8] sm:$0xff] }
  0x60   : > { %614 = vmatpush.msrb.mxu0 %v1521_v30  ;;  %634 = vmatpush.msrb.mxu1 %v1526_v31 }
  0x61   : > { %672 = vmatpush.msrb.mxu3 %v1557_v37  ;;  %653 = vmatpush.msrb.mxu2 %v1574_v40  ;;  %v688_v37 = vld [vmem:[%s1806_s5] sm:$0xff] }
  0x62   : > { %615 = vmatpush.msrb.mxu0 %v1531_v32  ;;  %635 = vmatpush.msrb.mxu1 %v1540_v33 }
  0x63   : > { %673 = vmatpush.msrb.mxu3 %v1576_v41  ;;  %654 = vmatpush.msrb.mxu2 %v1592_v44 }
  0x64   : > { %616 = vmatpush.msrb.mxu0 %v1562_v38  ;;  %636 = vmatpush.msrb.mxu1 %v1567_v39  ;;  %v732_v38 = vld [vmem:[%s1808_s7 + $0x18] sm:$0xff]  ;;  %v731_v39 = vld [vmem:[%s1808_s7 + $0x10] sm:$0xff] }
  0x65   : > { %674 = vmatpush.msrb.mxu3 %v1594_v45  ;;  %655 = vmatpush.msrb.mxu2 %v1609_v48  ;;  %v730_v45 = vld [vmem:[%s1808_s7 + $0x8] sm:$0xff]  ;;  %v764_v48 = vld [vmem:[#allocation8 + $0x10] sm:$0xff] }
  0x66   : > { %617 = vmatpush.msrb.mxu0 %v1581_v42  ;;  %637 = vmatpush.msrb.mxu1 %v1586_v43 }
  0x67   : > { %675 = vmatpush.msrb.mxu3 %v1611_v49  ;;  %656 = vmatpush.msrb.mxu2 %v1625_v53  ;;  %v1013_v49 = vld [vmem:[%s1807_s6] ss:$0 sm:$0xff]  ;;  %v763_v53 = vld [vmem:[#allocation8 + $0x8] sm:$0xff] }
  0x68   : > { %618 = vmatpush.msrb.mxu0 %v448_v46  ;;  %638 = vmatpush.msrb.mxu1 %v449_v47  ;;  %v729_v46 = vld [vmem:[%s1808_s7] sm:$0xff] }
  0x69   : > { %676 = vmatpush.msrb.mxu3 %v1627_v54  ;;  %657 = vmatpush.msrb.mxu2 %v1631_v55  ;;  %v765_v47 = vld [vmem:[#allocation8 + $0x18] sm:$0xff]  ;;  %v762_v54 = vld [vmem:[#allocation8] sm:$0xff] }
  0x6a   : > { %619 = vmatpush.msrb.mxu0 %v446_v50  ;;  %639 = vmatpush.msrb.mxu1 %v447_v51  ;;  %v1014_v55 = vld [vmem:[%s1809_s8] ss:$0 sm:$0xff] }
  0x6b   : > { %677 = vmatpush.msrb.mxu3 %v1633_v56  ;;  %658 = vmatpush.msrb.mxu2 %v1637_v57 }
  0x6c   : > { %708 = vmatpush.msra.mxu0 %v703_v16  ;;  %753 = vmatpush.msra.mxu1 %v732_v38 }
  0x6d   : > { %678 = vmatpush.msrb.mxu3 %v1639_v58  ;;  %659 = vmatpush.msrb.mxu2 %v481_v59  ;;  %v1015_v59 = vld [vmem:[%s1811_s10] ss:$0 sm:$0xff] }
  0x6e   : > { %709 = vmatpush.msra.mxu0 %v702_v17  ;;  %754 = vmatpush.msra.mxu1 %v731_v39 }
  0x6f   : > { %679 = vmatpush.msrb.mxu3 %v497_v60  ;;  %660 = vmatpush.msrb.mxu2 %v480_v61 }
  0x70   : > { %710 = vmatpush.msra.mxu0 %v701_v18  ;;  %755 = vmatpush.msra.mxu1 %v730_v45 }
  0x71   : > { %680 = vmatpush.msrb.mxu3 %v496_v62  ;;  %661 = vmatpush.msrb.mxu2 %v479_v63 }
  0x72   : > { %711 = vmatpush.msra.mxu0 %v700_v19  ;;  %756 = vmatpush.msra.mxu1 %v729_v46 }
  0x73   : > { %681 = vmatpush.msrb.mxu3 %v495_v0 }
  0x74   : > { %712 = vmatpush.msra.mxu0 %v699_v20 }
  0x76   : > { %713 = vmatpush.msra.mxu0 %v698_v21 }
  0x78   : > { %714 = vmatpush.msra.mxu0 %v697_v22 }
  0x7a   : > { %715 = vmatpush.msra.mxu0 %v696_v23 }
  0x7c   : > { %716 = vmatpush.msra.mxu0 %v695_v24 }
  0x7e   : > { %717 = vmatpush.msra.mxu0 %v694_v25 }
  0x80   : > { %718 = vmatpush.msra.mxu0 %v693_v26 }
  0x82   : > { %719 = vmatpush.msra.mxu0 %v692_v27 }
  0x84   : > { %720 = vmatpush.msra.mxu0 %v691_v34 }
  0x86   : > { %721 = vmatpush.msra.mxu0 %v690_v35 }
  0x88   : > { %722 = vmatpush.msra.mxu0 %v689_v36 }
  0x8a   : > { %723 = vmatpush.msra.mxu0 %v688_v37 }
  0xc8   : > { %v534_v4 = vpop.f32.mrf.mxu0  ;;  %v554_v5 = vpop.f32.mrf.mxu1 }
  0xc9   : > { %v535_v6 = vadd.f32 %v534_v4, %v513_v2  ;;  %v555_v7 = vadd.f32 %v554_v5, %v514_v3 }
  0xcb   : > { %v557_v8 = vmax.f32 %v535_v6, 0.0  ;;  %v558_v9 = vmax.f32 %v555_v7, 0.0 }
  0xcd   : > { %575 = vmatmul.f32.vlgmr.msra.gmra.mxu2 %v557_v8  ;;  %595 = vmatmul.f32.vlgmr.msra.gmra.mxu3 %v558_v9 }
  0xce   : > { %785 = vmatpush.msra.mxu2 %v765_v47 }
  0xd0   : > { %786 = vmatpush.msra.mxu2 %v764_v48 }
  0xd2   : > { %787 = vmatpush.msra.mxu2 %v763_v53 }
  0xd4   : > { %788 = vmatpush.msra.mxu2 %v762_v54 }
 0x150   : > { %v576_v10 = vpop.f32.mrf.mxu2  ;;  %v596_v11 = vpop.f32.mrf.mxu3 }
 0x151   : > { %v597_v12 = vadd.f32 %v596_v11, %v576_v10 }
 0x153   : > { %v599_v14 = vadd.f32 %v597_v12, %v1621_v52 }
 0x155   : > { %v603_v15 = vadd.f32 %v1012_v13, %v599_v14 }
 0x157   : > { %620 = vmatmul.f32.vlgmr.msrb.gmra.mxu0 %v603_v15  ;;  %640 = vmatmul.f32.vlgmr.msrb.gmra.mxu1 %v603_v15 }
 0x1d4   : > { %v621_v28 = vpop.f32.mrf.mxu0  ;;  %v641_v29 = vpop.f32.mrf.mxu1 }
 0x1d5   : > { %v622_v30 = vadd.f32 %v621_v28, %v513_v2  ;;  %v642_v31 = vadd.f32 %v641_v29, %v514_v3 }
 0x1d7   : > { %v644_v32 = vmax.f32 %v622_v30, 0.0  ;;  %v645_v33 = vmax.f32 %v642_v31, 0.0 }
 0x1d9   : > { %662 = vmatmul.f32.vlgmr.msrb.gmra.mxu2 %v644_v32  ;;  %682 = vmatmul.f32.vlgmr.msrb.gmra.mxu3 %v645_v33 }
 0x25c   : > { %v663_v40 = vpop.f32.mrf.mxu2  ;;  %v683_v41 = vpop.f32.mrf.mxu3 }
 0x25d   : > { %v684_v42 = vadd.f32 %v683_v41, %v663_v40 }
 0x25f   : > { %v686_v43 = vadd.f32 %v684_v42, %v603_v15 }
 0x261   : > { %v687_v44 = vadd.f32 %v1012_v13, %v686_v43 }
 0x263   : > { %724 = vmatmul.f32.vlgmr.msra.gmra.mxu0 %v687_v44 }
 0x2e0   : > { %v725_v50 = vpop.f32.mrf.mxu0 }
 0x2e1   : > { %v726_v51 = vadd.f32 %v1013_v49, %v725_v50 }
 0x2e3   : > { %v728_v52 = vmax.f32 %v726_v51, 0.0 }
 0x2e5   : > { %924 = vmatmul.msk.f32.vlgmr.msra.gmra.mxu1 %vm737_vm0, %v728_v52 }
 0x362   : > { %v758_v56 = vpop.f32.mrf.mxu1 }
 0x363   : > { %v759_v57 = vadd.f32 %v1014_v55, %v758_v56 }
 0x365   : > { %v761_v58 = vmax.f32 %v759_v57, 0.0 }
 0x367   : > { %925 = vmatmul.msk.f32.vlgmr.msra.gmra.mxu2 %vm737_vm0, %v761_v58 }
 0x3ea   : > { %v790_v60 = vpop.f32.mrf.mxu2 }
 0x3eb   : > { %v791_v61 = vadd.f32 %v1015_v59, %v790_v60 }
 0x3ed   : > { %793 = vst [vmem:[%s440_s17] sm:$0xff] %v791_v61 }
 0x3ee   : > { %1163 = shalt.err (!%p1160_p8)
}
 0x3ef   : > { %946 = dma.vmem_to_hbm [thread:$0]  (%p1316_p5), %s808_s19, 128, %s810_s23, %s795_s26  }
 0x3f0 PF: > { %s1831_s12 = sld [smem:[#allocation15_spill]]  ;;  %p973_p9 = scmp.ge.s32.totalorder %s1210_s20, 2 }
 0x3f2   : > { %p962_p10 = pnand %p973_p9, %p1320_p6 }
 0x3f4   : > { %p963_p11 = pneg %p962_p10 }
 0x3f6   : > { %s821_s24 = sand.u32 1, %s1831_s12  }
 0x3f7   : > { %s822_s13 = scalar_lea.sflag [#allocation4], %s821_s24 }
 0x3f8   : > { %1193 = dma.done.wait (%p963_p11), %s822_s13, 128  }
 0x3f9   : > { %1195 = vsyncadd (%p963_p11), %s822_s13, 4294967168  ;;  %s1833_s20 = sld [smem:[#allocation17_spill]]  ;;  %s1836_s17 = smov %s1202_s18 }
 0x3fa   : > { %s1834_s15 = sld [smem:[#allocation16_spill]] }
 0x3fb   : > { %s1835_s19 = sld [smem:[#allocation18_spill]] }
 0x3ff   : > { %p24_p12 = scmp.ge.s32.totalorder %s1833_s20, 6  }
 0x400   : > { %s1837_s18 = smov %s1834_s15 }
 0x401   :  { %26 = sbr.rel (!%p24_p12) target bundleno = 9 (0x9), region = 116 }
 0x406   :  { %828 = vsyncpa [#allocation3], 1 }
 0x407   :  { %830 = vsyncpa [#allocation3 + $0x1], 1 }
 0x408   :  { %831 = vsyncpa [#allocation6], 1 }
 0x409   :  { %832 = vsyncpa [#allocation9], 1 }
 0x40a   :  { %833 = vsyncpa [#allocation4], 1 }
 0x40b   :  { %835 = vsyncpa [#allocation4 + $0x1], 1 }

</bundles_post_ra>
